<compile_context>
chip_gen: v7x
topology: tpu7x:2x2x1
jax: 0.10.0
libtpu: 0.0.40
codegen_flags: <defaults>
</compile_context>

<pallas_src>
import jax
import jax.numpy as jnp
from jax.experimental import pallas as pl
from jax.experimental.pallas import tpu as pltpu  # noqa: F401  (TPU backend)

_EPS = 1e-5


def _round_up(x, m):
    return ((x + m - 1) // m) * m


def _full_spec(shape):
    # Whole array as one block (block_shape == full array dims is allowed).
    return pl.BlockSpec(shape, lambda: (0,) * len(shape))


def _make_fused_head_kernel(n_hidden):
    """(Linear + BN + ReLU) * n_hidden -> Linear(no bias), fully fused."""

    def kernel(*refs):
        if n_hidden > 0:
            x_ref, wh_ref, bh_ref, gh_ref, beh_ref, wf_ref, o_ref = refs
        else:
            x_ref, wf_ref, o_ref = refs

        x = x_ref[...].astype(jnp.float32)                     # (N, Cp)
        inv_n = jnp.float32(1.0 / x.shape[0])

        for i in range(n_hidden):                              # static unroll
            w = wh_ref[i]                                      # (Cp, Cp) bf16
            # Linear: bf16 operands on the MXU, f32 accumulation.
            y = jnp.dot(x.astype(jnp.bfloat16), w,
                        preferred_element_type=jnp.float32)
            y = y + bh_ref[i]                                  # (1, Cp) f32 bias
            # BatchNorm1d (training): one pass sum / sum-of-squares,
            # affine folded into a single scale/shift.
            mean = jnp.sum(y, axis=0, keepdims=True) * inv_n
            msq = jnp.sum(y * y, axis=0, keepdims=True) * inv_n
            var = jnp.maximum(msq - mean * mean, 0.0)          # biased variance
            scale = gh_ref[i] * jax.lax.rsqrt(var + _EPS)      # gamma * inv_std
            shift = beh_ref[i] - mean * scale
            # ReLU
            x = jnp.maximum(y * scale + shift, 0.0)

        # Final Linear (bias=False); output is lane-dense (Cop % 128 == 0).
        out = jnp.dot(x.astype(jnp.bfloat16), wf_ref[...],
                      preferred_element_type=jnp.float32)
        o_ref[...] = out.astype(o_ref.dtype)

    return kernel


# ---------------------------------------------------------------------------
# Wrapper
# ---------------------------------------------------------------------------
def projection_head_forward(x, params):
    """Fused forward; matches ProjectionHead.forward(x) (idx == -1)."""
    n_layers = len(params)
    n_hidden = n_layers - 1
    n, c_in = x.shape
    c_out = params[-1]["w"].shape[0]

    cp = _round_up(c_in, 128)
    cop = _round_up(c_out, 128)

    # Zero-pad feature dims to lane-dense widths (padding preserves semantics).
    xp = jnp.zeros((n, cp), jnp.float32).at[:, :c_in].set(x.astype(jnp.float32))

    wf = (jnp.zeros((cp, cop), jnp.bfloat16)
          .at[:c_in, :c_out].set(params[-1]["w"].T.astype(jnp.bfloat16)))

    if n_hidden > 0:
        wh = jnp.zeros((n_hidden, cp, cp), jnp.bfloat16)
        bh = jnp.zeros((n_hidden, 1, cp), jnp.float32)
        gh = jnp.zeros((n_hidden, 1, cp), jnp.float32)   # padded gamma = 0
        beh = jnp.zeros((n_hidden, 1, cp), jnp.float32)
        for i in range(n_hidden):
            p = params[i]
            wh = wh.at[i, :c_in, :c_in].set(p["w"].T.astype(jnp.bfloat16))
            bh = bh.at[i, 0, :c_in].set(p["b"])
            gh = gh.at[i, 0, :c_in].set(p["gamma"])
            beh = beh.at[i, 0, :c_in].set(p["beta"])
        args = (xp, wh, bh, gh, beh, wf)
    else:
        args = (xp, wf)

    flops = 2 * n * cp * cp * n_hidden + 2 * n * cp * cop
    bytes_accessed = int(sum(int(a.size) * a.dtype.itemsize for a in args)
                         + n * cop * 4)

    out = pl.pallas_call(
        _make_fused_head_kernel(n_hidden),
        out_shape=jax.ShapeDtypeStruct((n, cop), jnp.float32),
        grid=(),
        in_specs=[_full_spec(tuple(a.shape)) for a in args],
        out_specs=_full_spec((n, cop)),
        cost_estimate=pl.CostEstimate(
            flops=flops,
            transcendentals=n_hidden * cp,
            bytes_accessed=bytes_accessed),
    )(*args)
    return out[:, :c_out]


# ---------------------------------------------------------------------------
# Parameter construction (deterministic, mirrors PyTorch default init shapes)
# ---------------------------------------------------------------------------
def init_projection_head(key, n_layers, in_channels, out_channels):
    params = []
    bound = 1.0 / float(in_channels) ** 0.5
    for i in range(n_layers):
        key, kw, kb = jax.random.split(key, 3)
        if i != n_layers - 1:
            w = jax.random.uniform(kw, (in_channels, in_channels),
                                   jnp.float32, -bound, bound)     # (out, in)
            b = jax.random.uniform(kb, (in_channels,), jnp.float32, -bound, bound)
            params.append({"w": w, "b": b,
                           "gamma": jnp.ones((in_channels,), jnp.float32),
                           "beta": jnp.zeros((in_channels,), jnp.float32)})
        else:
            w = jax.random.uniform(kw, (out_channels, in_channels),
                                   jnp.float32, -bound, bound)     # (out, in)
            params.append({"w": w})
    return params


# ---------------------------------------------------------------------------
# Reference (pure JAX, same bf16-matmul / f32-accumulate numerics)
# ---------------------------------------------------------------------------
def _reference_forward(x, params):
    x = x.astype(jnp.float32)
    for p in params[:-1]:
        y = jnp.dot(x.astype(jnp.bfloat16), p["w"].T.astype(jnp.bfloat16),
                    preferred_element_type=jnp.float32) + p["b"]
        mean = jnp.mean(y, axis=0, keepdims=True)
        var = jnp.mean((y - mean) ** 2, axis=0, keepdims=True)
        y = (y - mean) / jnp.sqrt(var + _EPS) * p["gamma"] + p["beta"]
        x = jnp.maximum(y, 0.0)
    return jnp.dot(x.astype(jnp.bfloat16), params[-1]["w"].T.astype(jnp.bfloat16),
                   preferred_element_type=jnp.float32)


if __name__ == "__main__":
    key = jax.random.PRNGKey(0)
    n_layers, in_channels, out_channels = 3, 32, 16
    batch = 8

    key, kx, kp = jax.random.split(key, 3)
    x = jax.random.normal(kx, (batch, in_channels), jnp.float32)
    params = init_projection_head(kp, n_layers, in_channels, out_channels)

    out = projection_head_forward(x, params)
    out = jax.block_until_ready(out)

    ref = _reference_forward(x, params)
    assert out.shape == (batch, out_channels), out.shape
    assert jnp.allclose(out, ref, atol=2e-3, rtol=2e-3), float(
        jnp.max(jnp.abs(out - ref))
    )
    print("KERNEL_OK")
</pallas_src>

<mosaic_0001>
module attributes {stable_mosaic.version = 11 : i64} {
  func.func @kernel(%arg0: memref<8x128xf32, #tpu.memory_space<vmem>>, %arg1: memref<2x128x128xbf16, #tpu.memory_space<vmem>>, %arg2: memref<2x1x128xf32, #tpu.memory_space<vmem>>, %arg3: memref<2x1x128xf32, #tpu.memory_space<vmem>>, %arg4: memref<2x1x128xf32, #tpu.memory_space<vmem>>, %arg5: memref<128x128xbf16, #tpu.memory_space<vmem>>, %arg6: memref<8x128xf32, #tpu.memory_space<vmem>>) attributes {dimension_semantics = [], scalar_prefetch = 0 : i64, scratch_operands = 0 : i64, tpu.core_type = #tpu.core_type<tc>} {
    %c0 = arith.constant 0 : index
    %c0_0 = arith.constant 0 : index
    %0 = vector.load %arg0[%c0, %c0_0] : memref<8x128xf32, #tpu.memory_space<vmem>>, vector<8x128xf32>
    %c0_1 = arith.constant 0 : index
    %c0_2 = arith.constant 0 : index
    %c0_3 = arith.constant 0 : index
    %1 = vector.load %arg1[%c0_1, %c0_2, %c0_3] : memref<2x128x128xbf16, #tpu.memory_space<vmem>>, vector<1x128x128xbf16>
    %2 = vector.shape_cast %1 : vector<1x128x128xbf16> to vector<128x128xbf16>
    %3 = arith.truncf %0 : vector<8x128xf32> to vector<8x128xbf16>
    %cst = arith.constant dense<0.000000e+00> : vector<8x128xf32>
    %4 = tpu.matmul %3, %2, %cst {dimension_numbers = #tpu.dot_dimension_numbers<[1], [0], [0], [1], [0, 0, 1, 1], [], []>} : vector<8x128xbf16>, vector<128x128xbf16>, vector<8x128xf32> -> vector<8x128xf32>
    %c0_4 = arith.constant 0 : index
    %c0_5 = arith.constant 0 : index
    %c0_6 = arith.constant 0 : index
    %5 = vector.load %arg2[%c0_4, %c0_5, %c0_6] : memref<2x1x128xf32, #tpu.memory_space<vmem>>, vector<1x1x128xf32>
    %6 = vector.shape_cast %5 : vector<1x1x128xf32> to vector<1x128xf32>
    %7 = vector.broadcast %6 : vector<1x128xf32> to vector<8x128xf32>
    %8 = arith.addf %4, %7 : vector<8x128xf32>
    %cst_7 = arith.constant dense<0.000000e+00> : vector<128xf32>
    %9 = vector.multi_reduction <add>, %8, %cst_7 [0] : vector<8x128xf32> to vector<128xf32>
    %10 = vector.shape_cast %9 : vector<128xf32> to vector<1x128xf32>
    %cst_8 = arith.constant 1.250000e-01 : f32
    %11 = vector.broadcast %cst_8 : f32 to vector<1x128xf32>
    %12 = arith.mulf %10, %11 : vector<1x128xf32>
    %13 = arith.mulf %8, %8 : vector<8x128xf32>
    %cst_9 = arith.constant dense<0.000000e+00> : vector<128xf32>
    %14 = vector.multi_reduction <add>, %13, %cst_9 [0] : vector<8x128xf32> to vector<128xf32>
    %15 = vector.shape_cast %14 : vector<128xf32> to vector<1x128xf32>
    %cst_10 = arith.constant 1.250000e-01 : f32
    %16 = vector.broadcast %cst_10 : f32 to vector<1x128xf32>
    %17 = arith.mulf %15, %16 : vector<1x128xf32>
    %18 = arith.mulf %12, %12 : vector<1x128xf32>
    %19 = arith.subf %17, %18 : vector<1x128xf32>
    %cst_11 = arith.constant 0.000000e+00 : f32
    %20 = vector.broadcast %cst_11 : f32 to vector<1x128xf32>
    %21 = arith.maximumf %19, %20 : vector<1x128xf32>
    %c0_12 = arith.constant 0 : index
    %c0_13 = arith.constant 0 : index
    %c0_14 = arith.constant 0 : index
    %22 = vector.load %arg3[%c0_12, %c0_13, %c0_14] : memref<2x1x128xf32, #tpu.memory_space<vmem>>, vector<1x1x128xf32>
    %23 = vector.shape_cast %22 : vector<1x1x128xf32> to vector<1x128xf32>
    %cst_15 = arith.constant 9.99999974E-6 : f32
    %24 = vector.broadcast %cst_15 : f32 to vector<1x128xf32>
    %25 = arith.addf %21, %24 : vector<1x128xf32>
    %26 = math.rsqrt %25 : vector<1x128xf32>
    %27 = arith.mulf %23, %26 : vector<1x128xf32>
    %c0_16 = arith.constant 0 : index
    %c0_17 = arith.constant 0 : index
    %c0_18 = arith.constant 0 : index
    %28 = vector.load %arg4[%c0_16, %c0_17, %c0_18] : memref<2x1x128xf32, #tpu.memory_space<vmem>>, vector<1x1x128xf32>
    %29 = vector.shape_cast %28 : vector<1x1x128xf32> to vector<1x128xf32>
    %30 = arith.mulf %12, %27 : vector<1x128xf32>
    %31 = arith.subf %29, %30 : vector<1x128xf32>
    %32 = vector.broadcast %27 : vector<1x128xf32> to vector<8x128xf32>
    %33 = arith.mulf %8, %32 : vector<8x128xf32>
    %34 = vector.broadcast %31 : vector<1x128xf32> to vector<8x128xf32>
    %35 = arith.addf %33, %34 : vector<8x128xf32>
    %cst_19 = arith.constant 0.000000e+00 : f32
    %36 = vector.broadcast %cst_19 : f32 to vector<8x128xf32>
    %37 = arith.maximumf %35, %36 : vector<8x128xf32>
    %c1 = arith.constant 1 : index
    %c0_20 = arith.constant 0 : index
    %c0_21 = arith.constant 0 : index
    %38 = vector.load %arg1[%c1, %c0_20, %c0_21] : memref<2x128x128xbf16, #tpu.memory_space<vmem>>, vector<1x128x128xbf16>
    %39 = vector.shape_cast %38 : vector<1x128x128xbf16> to vector<128x128xbf16>
    %40 = arith.truncf %37 : vector<8x128xf32> to vector<8x128xbf16>
    %cst_22 = arith.constant dense<0.000000e+00> : vector<8x128xf32>
    %41 = tpu.matmul %40, %39, %cst_22 {dimension_numbers = #tpu.dot_dimension_numbers<[1], [0], [0], [1], [0, 0, 1, 1], [], []>} : vector<8x128xbf16>, vector<128x128xbf16>, vector<8x128xf32> -> vector<8x128xf32>
    %c1_23 = arith.constant 1 : index
    %c0_24 = arith.constant 0 : index
    %c0_25 = arith.constant 0 : index
    %42 = vector.load %arg2[%c1_23, %c0_24, %c0_25] : memref<2x1x128xf32, #tpu.memory_space<vmem>>, vector<1x1x128xf32>
    %43 = vector.shape_cast %42 : vector<1x1x128xf32> to vector<1x128xf32>
    %44 = vector.broadcast %43 : vector<1x128xf32> to vector<8x128xf32>
    %45 = arith.addf %41, %44 : vector<8x128xf32>
    %cst_26 = arith.constant dense<0.000000e+00> : vector<128xf32>
    %46 = vector.multi_reduction <add>, %45, %cst_26 [0] : vector<8x128xf32> to vector<128xf32>
    %47 = vector.shape_cast %46 : vector<128xf32> to vector<1x128xf32>
    %cst_27 = arith.constant 1.250000e-01 : f32
    %48 = vector.broadcast %cst_27 : f32 to vector<1x128xf32>
    %49 = arith.mulf %47, %48 : vector<1x128xf32>
    %50 = arith.mulf %45, %45 : vector<8x128xf32>
    %cst_28 = arith.constant dense<0.000000e+00> : vector<128xf32>
    %51 = vector.multi_reduction <add>, %50, %cst_28 [0] : vector<8x128xf32> to vector<128xf32>
    %52 = vector.shape_cast %51 : vector<128xf32> to vector<1x128xf32>
    %cst_29 = arith.constant 1.250000e-01 : f32
    %53 = vector.broadcast %cst_29 : f32 to vector<1x128xf32>
    %54 = arith.mulf %52, %53 : vector<1x128xf32>
    %55 = arith.mulf %49, %49 : vector<1x128xf32>
    %56 = arith.subf %54, %55 : vector<1x128xf32>
    %cst_30 = arith.constant 0.000000e+00 : f32
    %57 = vector.broadcast %cst_30 : f32 to vector<1x128xf32>
    %58 = arith.maximumf %56, %57 : vector<1x128xf32>
    %c1_31 = arith.constant 1 : index
    %c0_32 = arith.constant 0 : index
    %c0_33 = arith.constant 0 : index
    %59 = vector.load %arg3[%c1_31, %c0_32, %c0_33] : memref<2x1x128xf32, #tpu.memory_space<vmem>>, vector<1x1x128xf32>
    %60 = vector.shape_cast %59 : vector<1x1x128xf32> to vector<1x128xf32>
    %cst_34 = arith.constant 9.99999974E-6 : f32
    %61 = vector.broadcast %cst_34 : f32 to vector<1x128xf32>
    %62 = arith.addf %58, %61 : vector<1x128xf32>
    %63 = math.rsqrt %62 : vector<1x128xf32>
    %64 = arith.mulf %60, %63 : vector<1x128xf32>
    %c1_35 = arith.constant 1 : index
    %c0_36 = arith.constant 0 : index
    %c0_37 = arith.constant 0 : index
    %65 = vector.load %arg4[%c1_35, %c0_36, %c0_37] : memref<2x1x128xf32, #tpu.memory_space<vmem>>, vector<1x1x128xf32>
    %66 = vector.shape_cast %65 : vector<1x1x128xf32> to vector<1x128xf32>
    %67 = arith.mulf %49, %64 : vector<1x128xf32>
    %68 = arith.subf %66, %67 : vector<1x128xf32>
    %69 = vector.broadcast %64 : vector<1x128xf32> to vector<8x128xf32>
    %70 = arith.mulf %45, %69 : vector<8x128xf32>
    %71 = vector.broadcast %68 : vector<1x128xf32> to vector<8x128xf32>
    %72 = arith.addf %70, %71 : vector<8x128xf32>
    %cst_38 = arith.constant 0.000000e+00 : f32
    %73 = vector.broadcast %cst_38 : f32 to vector<8x128xf32>
    %74 = arith.maximumf %72, %73 : vector<8x128xf32>
    %75 = arith.truncf %74 : vector<8x128xf32> to vector<8x128xbf16>
    %c0_39 = arith.constant 0 : index
    %c0_40 = arith.constant 0 : index
    %76 = vector.load %arg5[%c0_39, %c0_40] : memref<128x128xbf16, #tpu.memory_space<vmem>>, vector<128x128xbf16>
    %cst_41 = arith.constant dense<0.000000e+00> : vector<8x128xf32>
    %77 = tpu.matmul %75, %76, %cst_41 {dimension_numbers = #tpu.dot_dimension_numbers<[1], [0], [0], [1], [0, 0, 1, 1], [], []>} : vector<8x128xbf16>, vector<128x128xbf16>, vector<8x128xf32> -> vector<8x128xf32>
    %c0_42 = arith.constant 0 : index
    %c0_43 = arith.constant 0 : index
    %78 = vector.load %arg6[%c0_42, %c0_43] : memref<8x128xf32, #tpu.memory_space<vmem>>, vector<8x128xf32>
    tpu.vector_store %arg6[%c0_42, %c0_43], %77 {strides = array<i32>} : memref<8x128xf32, #tpu.memory_space<vmem>>, vector<8x128xf32>,
    return
  }
}

</mosaic_0001>

<bundles_post_ra>
// kernel: tpu_custom_call.1
= control target key start
LH: loop header
LB: loop body
LE: loop exit
PB: predicated region body
PF: predicated region fallthrough
CT: control target
= control target key end

     0   :  { %11 = vsyncpa [#allocation3], 0  ;;  %s892_s0 = inlined_call_operand.hbm [shape: f32[8,128], index: 0, kind: input, shape index: {}]   ;;  %s893_s1 = inlined_call_operand.hbm [shape: bf16[2,128,128], index: 1, kind: input, shape index: {}]   ;;  %s894_s2 = inlined_call_operand.vmem [shape: f32[2,1,128], index: 2, kind: input, shape index: {}]   ;;  %s895_s3 = inlined_call_operand.vmem [shape: f32[2,1,128], index: 3, kind: input, shape index: {}]   ;;  %s896_s4 = inlined_call_operand.vmem [shape: f32[2,1,128], index: 4, kind: input, shape index: {}]   ;;  %s897_s5 = inlined_call_operand.hbm [shape: bf16[128,128], index: 5, kind: input, shape index: {}]   ;;  %s898_s6 = inlined_call_operand.hbm [shape: f32[8,128], index: 6, kind: output, shape index: {}]  }
   0x1   :  { %12 = vsyncpa [#allocation6], 0 }
   0x2   :  { %13 = vsyncpa [#allocation4], 0  ;;  %s741_s21 = smov [#allocation5]   ;;  %s647_s25 = scalar_lea.hbm %s893_s1, 2048 }
   0x3   :  { %s29_s22 = sshll.u32 %s741_s21, 4  ;;  %p648_p0 = scmp.ne.s32.totalorder %s893_s1, %s647_s25  ;;  %s30_s22 = int_to_ptr.vmem [resolvable:$true] %s29_s22 }
   0x4   :  { %p651_p1 = scmp.lt.u32.totalorder %s647_s25, %s893_s1 }
   0x6   :  { %p653_p2 = pnand %p651_p1, %p648_p0 }
   0x8   :  { %656 = shalt.err (!%p653_p2)
}
   0x9   :  { %s657_s30 = scalar_lea.vmem %s30_s22, 2048  ;;  %p662_p4 = scmp.lt.s32.totalorder %s30_s22, %s30_s22 }
   0xa   :  { %p658_p3 = scmp.ne.s32.totalorder %s30_s22, %s657_s30  ;;  %p663_p5 = scmp.lt.s32.totalorder %s657_s30, %s657_s30 }
   0xc   :  { %p664_p6 = por %p663_p5, %p662_p4 }
   0xe   :  { %p665_p7 = pnand %p664_p6, %p658_p3 }
  0x10   :  { %668 = shalt.err (!%p665_p7)
}
  0x11   :  { %s742_s7 = smov 64   ;;  %s743_s8 = smov 4  }
  0x12   :  { %35 = dma.hbm_to_vmem [thread:$0]  %s893_s1, 2048, %s30_s22, [#allocation6], %s742_s7, %s742_s7, %s743_s8  }
  0x13   :  { %s744_s11 = smov [#allocation2]   ;;  %s745_s13 = smov [#allocation7]  }
  0x14   :  { %s20_s12 = sshll.u32 %s744_s11, 4  ;;  %s47_s14 = sshll.u32 %s745_s13, 4  ;;  %s21_s12 = int_to_ptr.vmem [resolvable:$true] %s20_s12  ;;  %s48_s14 = int_to_ptr.vmem [resolvable:$true] %s47_s14 }
  0x15   :  { %s669_s17 = scalar_lea.hbm %s892_s0, 128 }
  0x16   :  { %p670_p8 = scmp.ne.s32.totalorder %s892_s0, %s669_s17  ;;  %p673_p9 = scmp.lt.u32.totalorder %s669_s17, %s892_s0 }
  0x18   :  { %p675_p10 = pnand %p673_p9, %p670_p8 }
  0x1a   :  { %678 = shalt.err (!%p675_p10)
}
  0x1b   :  { %s679_s1 = scalar_lea.vmem %s21_s12, 128  ;;  %p684_p12 = scmp.lt.s32.totalorder %s21_s12, %s21_s12 }
  0x1c   :  { %p680_p11 = scmp.ne.s32.totalorder %s21_s12, %s679_s1  ;;  %p685_p13 = scmp.lt.s32.totalorder %s679_s1, %s679_s1 }
  0x1e   :  { %p686_p0 = por %p685_p13, %p684_p12 }
  0x20   :  { %p687_p1 = pnand %p686_p0, %p680_p11 }
  0x22   :  { %690 = shalt.err (!%p687_p1)
}
  0x23   :  { %23 = dma.hbm_to_vmem [thread:$0]  %s892_s0, 128, %s21_s12, [#allocation3]  }
  0x24   :  { %s691_s26 = scalar_lea.hbm %s897_s5, 1024 }
  0x25   :  { %p692_p2 = scmp.ne.s32.totalorder %s897_s5, %s691_s26  ;;  %p695_p3 = scmp.lt.u32.totalorder %s691_s26, %s897_s5 }
  0x27   :  { %p697_p4 = pnand %p695_p3, %p692_p2 }
  0x29   :  { %700 = shalt.err (!%p697_p4)
}
  0x2a   :  { %s701_s9 = scalar_lea.vmem %s48_s14, 1024  ;;  %p706_p6 = scmp.lt.s32.totalorder %s48_s14, %s48_s14 }
  0x2b   :  { %p702_p5 = scmp.ne.s32.totalorder %s48_s14, %s701_s9  ;;  %p707_p7 = scmp.lt.s32.totalorder %s701_s9, %s701_s9 }
  0x2d   :  { %p708_p8 = por %p707_p7, %p706_p6 }
  0x2f   :  { %p709_p9 = pnand %p708_p8, %p702_p5 }
  0x31   :  { %712 = shalt.err (!%p709_p9)
}
  0x32   :  { %53 = dma.hbm_to_vmem [thread:$0]  %s897_s5, 1024, %s48_s14, [#allocation6], %s742_s7, %s742_s7, %s743_s8  }
  0x33   :  { %735 = dma.done.wait [#allocation3], 128  }
  0x34   :  { %736 = vsyncadd [#allocation3], 4294967168 }
  0x35   :  { %737 = dma.done.wait [#allocation6], 3072  }
  0x36   :  { %738 = vsyncadd [#allocation6], 4294964224  ;;  %v746_v0 = vmov 0.0   ;;  %vm747_vm0 = vmmov 0   ;;  %v619_v1 = vld [vmem:[#allocation5] sm:$0xff]   ;;  %v620_v2 = vld [vmem:[#allocation5 + $0x8] sm:$0xff]   ;;  %v203_v44 = vlaneseq }
  0x37   :  { %551 = vmatprep.subr.bf16.mxu0 %v746_v0  ;;  %567 = vmatprep.mubr.msk.bf16.mxu0 %vm747_vm0, %v746_v0  ;;  %v621_v3 = vld [vmem:[#allocation5 + $0x10] sm:$0xff]   ;;  %v622_v4 = vld [vmem:[#allocation5 + $0x18] sm:$0xff]   ;;  %v623_v5 = vld [vmem:[#allocation5 + $0x20] sm:$0xff]   ;;  %s748_s19 = smov [#allocation8]  }
  0x38   :  { %571 = vmatprep.subr.bf16.mxu1 %v746_v0  ;;  %587 = vmatprep.mubr.msk.bf16.mxu1 %vm747_vm0, %v746_v0  ;;  %v624_v6 = vld [vmem:[#allocation5 + $0x28] sm:$0xff]   ;;  %v625_v7 = vld [vmem:[#allocation5 + $0x30] sm:$0xff]   ;;  %v626_v8 = vld [vmem:[#allocation5 + $0x38] sm:$0xff]   ;;  %v204_v45 = vshrl.u32 %v203_v44, 7  ;;  %s485_s20 = sshll.u32 %s748_s19, 4  ;;  %s486_s20 = int_to_ptr.vmem [resolvable:$true] %s485_s20 }
  0x39   :  { %552 = vmatpush3.bf16.msra.mxu0 %v619_v1  ;;  %v64_v9 = vld [vmem:[#allocation2] sm:$0xff]  ;;  %v627_v11 = vld [vmem:[#allocation5 + $0x40] sm:$0xff]   ;;  %v628_v12 = vld [vmem:[#allocation5 + $0x48] sm:$0xff]   ;;  %p718_p11 = scmp.lt.s32.totalorder %s486_s20, %s486_s20 }
  0x3a   :  { %553 = vmatprep.subr.bf16.mxu0 %v746_v0  ;;  %v81_v10 = vpack.c.bf16 %v64_v9, %v64_v9  ;;  %572 = vmatpush3.bf16.msra.mxu1 %v627_v11  ;;  %v629_v13 = vld [vmem:[#allocation5 + $0x50] sm:$0xff]   ;;  %v630_v14 = vld [vmem:[#allocation5 + $0x58] sm:$0xff]   ;;  %v631_v15 = vld [vmem:[#allocation5 + $0x60] sm:$0xff]   ;;  %v855_v47 = vsub.s32 0, %v204_v45 }
  0x3b   :  { %573 = vmatprep.subr.bf16.mxu1 %v746_v0  ;;  %v632_v16 = vld [vmem:[#allocation5 + $0x68] sm:$0xff]   ;;  %v633_v17 = vld [vmem:[#allocation5 + $0x70] sm:$0xff]   ;;  %v634_v18 = vld [vmem:[#allocation5 + $0x78] sm:$0xff]  }
  0x3c   :  { %v495_v19 = vld [vmem:[%s894_s2] ss:$0 sm:$0xff]  ;;  %v635_v59 = vld [vmem:[#allocation7] sm:$0xff]   ;;  %v636_v60 = vld [vmem:[#allocation7 + $0x8] sm:$0xff]  }
  0x3d   :  { %554 = vmatpush3.bf16.msra.mxu0 %v620_v2  ;;  %v195_v46 = vld [vmem:[%s895_s3] sm:$0x1]  ;;  %v637_v61 = vld [vmem:[#allocation7 + $0x10] sm:$0xff]   ;;  %v639_v63 = vld [vmem:[#allocation7 + $0x20] sm:$0xff]  }
  0x3e   :  { %555 = vmatprep.subr.bf16.mxu0 %v746_v0  ;;  %574 = vmatpush3.bf16.msra.mxu1 %v628_v12  ;;  %v199_v50 = vld [vmem:[%s896_s4] sm:$0x1]  ;;  %v640_v1 = vld [vmem:[#allocation7 + $0x28] sm:$0xff]   ;;  %v641_v2 = vld [vmem:[#allocation7 + $0x30] sm:$0xff]  }
  0x3f   :  { %575 = vmatprep.subr.bf16.mxu1 %v746_v0  ;;  %v638_v62 = vld [vmem:[#allocation7 + $0x18] sm:$0xff]  }
  0x41   :  { %556 = vmatpush3.bf16.msra.mxu0 %v621_v3  ;;  %v642_v3 = vld [vmem:[#allocation7 + $0x38] sm:$0xff]  }
  0x42   :  { %557 = vmatprep.subr.bf16.mxu0 %v746_v0  ;;  %576 = vmatpush3.bf16.msra.mxu1 %v629_v13 }
  0x43   :  { %577 = vmatprep.subr.bf16.mxu1 %v746_v0 }
  0x45   :  { %558 = vmatpush3.bf16.msra.mxu0 %v622_v4  ;;  %v505_v4 = vld [vmem:[%s894_s2 + $0x1] ss:$0 sm:$0xff] }
  0x46   :  { %559 = vmatprep.subr.bf16.mxu0 %v746_v0  ;;  %578 = vmatpush3.bf16.msra.mxu1 %v630_v14 }
  0x47   :  { %579 = vmatprep.subr.bf16.mxu1 %v746_v0 }
  0x49   :  { %560 = vmatpush3.bf16.msra.mxu0 %v623_v5 }
  0x4a   :  { %561 = vmatprep.subr.bf16.mxu0 %v746_v0  ;;  %580 = vmatpush3.bf16.msra.mxu1 %v631_v15 }
  0x4b   :  { %581 = vmatprep.subr.bf16.mxu1 %v746_v0 }
  0x4d   :  { %562 = vmatpush3.bf16.msra.mxu0 %v624_v6 }
  0x4e   :  { %563 = vmatprep.subr.bf16.mxu0 %v746_v0  ;;  %582 = vmatpush3.bf16.msra.mxu1 %v632_v16 }
  0x4f   :  { %583 = vmatprep.subr.bf16.mxu1 %v746_v0 }
  0x51   :  { %564 = vmatpush3.bf16.msra.mxu0 %v625_v7 }
  0x52   :  { %565 = vmatprep.subr.bf16.mxu0 %v746_v0  ;;  %584 = vmatpush3.bf16.msra.mxu1 %v633_v17 }
  0x53   :  { %585 = vmatprep.subr.bf16.mxu1 %v746_v0 }
  0x55   :  { %566 = vmatpush3.bf16.msra.mxu0 %v626_v8 }
  0x56   :  { %591 = vmatprep.subr.bf16.mxu0 %v746_v0  ;;  %586 = vmatpush3.bf16.msra.mxu1 %v634_v18 }
  0x58   :  { %568 = vmatmul.mubr.bf16.vlgmr.msra.gmra.mrb[0].mxu0 %v81_v10 }
  0x59   :  { %607 = vmatprep.mubr.msk.bf16.mxu0 %vm747_vm0, %v746_v0  ;;  %592 = vmatpush3.bf16.msra.mxu0 %v635_v59 }
  0x5a   :  { %593 = vmatprep.subr.bf16.mxu0 %v746_v0 }
  0x5d   :  { %594 = vmatpush3.bf16.msra.mxu0 %v636_v60 }
  0x5e   :  { %595 = vmatprep.subr.bf16.mxu0 %v746_v0 }
  0x61   :  { %596 = vmatpush3.bf16.msra.mxu0 %v637_v61 }
  0x62   :  { %597 = vmatprep.subr.bf16.mxu0 %v746_v0 }
  0x65   :  { %598 = vmatpush3.bf16.msra.mxu0 %v638_v62 }
  0x66   :  { %599 = vmatprep.subr.bf16.mxu0 %v746_v0 }
  0x69   :  { %600 = vmatpush3.bf16.msra.mxu0 %v639_v63 }
  0x6a   :  { %601 = vmatprep.subr.bf16.mxu0 %v746_v0 }
  0x6d   :  { %602 = vmatpush3.bf16.msra.mxu0 %v640_v1 }
  0x6e   :  { %603 = vmatprep.subr.bf16.mxu0 %v746_v0 }
  0x71   :  { %604 = vmatpush3.bf16.msra.mxu0 %v641_v2 }
  0x72   :  { %605 = vmatprep.subr.bf16.mxu0 %v746_v0 }
  0x75   :  { %606 = vmatpush3.bf16.msra.mxu0 %v642_v3 }
 0x12b   :  { %v171_v20 = vpop.f32.mrb[0].mxu0 }
 0x12c   :  { %v172_v21 = vadd.f32 %v495_v19, %v171_v20  ;;  %v569_v22 = vpop.f32.mrb[1].mxu0 }
 0x12d   :  { %v174_v23 = vpop.f32.mrb[2].mxu0 }
 0x12e   :  { %v177_v24 = vrot.slane %v172_v21, 4  ;;  %v184_v25 = vmul.f32 %v172_v21, %v172_v21  ;;  %v570_v26 = vpop.f32.mrb[3].mxu0 }
 0x130   :  { %v178_v27 = vadd.f32 %v177_v24, %v172_v21  ;;  %v185_v28 = vrot.slane %v184_v25, 4 }
 0x132   :  { %v179_v29 = vrot.slane %v178_v27, 2  ;;  %v186_v30 = vadd.f32 %v185_v28, %v184_v25  ;;  %v514_v28 = vld [vmem:[%s895_s3 + $0x1] sm:$0x1]  ;;  %s713_s3 = scalar_lea.vmem %s486_s20, 128 }
 0x133   :  { %p714_p10 = scmp.ne.s32.totalorder %s486_s20, %s713_s3  ;;  %p719_p12 = scmp.lt.s32.totalorder %s713_s3, %s713_s3 }
 0x134   :  { %v180_v31 = vadd.f32 %v179_v29, %v178_v27  ;;  %v187_v32 = vrot.slane %v186_v30, 2 }
 0x135   :  { %p720_p13 = por %p719_p12, %p718_p11 }
 0x136   :  { %v181_v33 = vrot.slane %v180_v31, 1  ;;  %v188_v34 = vadd.f32 %v187_v32, %v186_v30 }
 0x137   :  { %p721_p0 = pnand %p720_p13, %p714_p10 }
 0x138   :  { %v182_v35 = vadd.f32 %v181_v33, %v180_v31  ;;  %v189_v36 = vrot.slane %v188_v34, 1  ;;  %v515_v31 = vld [vmem:[%s896_s4 + $0x1] sm:$0x1] }
 0x13a   :  { %v190_v37 = vadd.f32 %v189_v36, %v188_v34  ;;  %v183_v38 = vmul.f32 0.125, %v182_v35 }
 0x13c   :  { %v191_v39 = vmul.f32 0.125, %v190_v37  ;;  %v192_v40 = vmul.f32 %v183_v38, %v183_v38 }
 0x13e   :  { %v193_v41 = vsub.f32 %v191_v39, %v192_v40 }
 0x140   :  { %v194_v42 = vmax.f32 %v193_v41, 0.0 }
 0x142   :  { %v196_v43 = vadd.f32 1e-05, %v194_v42 }
 0x144   :  { %643 = vrsqrt.f32 %v196_v43 }
 0x14e   :  { %v644_v48 = vpop.eup %643 }
 0x14f   :  { %v198_v49 = vmul.f32 %v644_v48, %v195_v46 }
 0x151   :  { %v200_v51 = vmul.f32 %v198_v49, %v183_v38  ;;  %v206_v52 = vrot.slane %v198_v49, %v855_v47 }
 0x153   :  { %v201_v53 = vsub.f32 %v199_v50, %v200_v51  ;;  %v208_v54 = vmul.f32 %v206_v52, %v172_v21 }
 0x155   :  { %v213_v55 = vrot.slane %v201_v53, %v855_v47 }
 0x157   :  { %v215_v56 = vadd.f32 %v213_v55, %v208_v54 }
 0x159   :  { %v216_v57 = vmax.f32 %v215_v56, 0.0 }
 0x15b   :  { %v234_v58 = vpack.c.bf16 %v216_v57, %v216_v57 }
 0x15d   :  { %588 = vmatmul.mubr.bf16.vlgmr.msra.gmra.mrb[0].mxu1 %v234_v58 }
 0x230   :  { %v325_v5 = vpop.f32.mrb[0].mxu1 }
 0x231   :  { %v326_v6 = vadd.f32 %v505_v4, %v325_v5  ;;  %v589_v7 = vpop.f32.mrb[1].mxu1 }
 0x232   :  { %v328_v8 = vpop.f32.mrb[2].mxu1 }
 0x233   :  { %v331_v9 = vrot.slane %v326_v6, 4  ;;  %v338_v10 = vmul.f32 %v326_v6, %v326_v6  ;;  %v590_v11 = vpop.f32.mrb[3].mxu1 }
 0x235   :  { %v332_v12 = vadd.f32 %v331_v9, %v326_v6  ;;  %v339_v13 = vrot.slane %v338_v10, 4 }
 0x237   :  { %v333_v14 = vrot.slane %v332_v12, 2  ;;  %v340_v15 = vadd.f32 %v339_v13, %v338_v10 }
 0x239   :  { %v334_v16 = vadd.f32 %v333_v14, %v332_v12  ;;  %v341_v17 = vrot.slane %v340_v15, 2 }
 0x23b   :  { %v335_v18 = vrot.slane %v334_v16, 1  ;;  %v342_v0 = vadd.f32 %v341_v17, %v340_v15 }
 0x23d   :  { %v336_v19 = vadd.f32 %v335_v18, %v334_v16  ;;  %v343_v20 = vrot.slane %v342_v0, 1 }
 0x23f   :  { %v337_v21 = vmul.f32 0.125, %v336_v19  ;;  %v344_v22 = vadd.f32 %v343_v20, %v342_v0 }
 0x241   :  { %v345_v23 = vmul.f32 0.125, %v344_v22  ;;  %v346_v24 = vmul.f32 %v337_v21, %v337_v21 }
 0x243   :  { %v347_v25 = vsub.f32 %v345_v23, %v346_v24 }
 0x245   :  { %v348_v26 = vmax.f32 %v347_v25, 0.0 }
 0x247   :  { %v351_v27 = vadd.f32 1e-05, %v348_v26 }
 0x249   :  { %645 = vrsqrt.f32 %v351_v27 }
 0x253   :  { %v646_v29 = vpop.eup %645 }
 0x254   :  { %v353_v30 = vmul.f32 %v646_v29, %v514_v28 }
 0x256   :  { %v362_v32 = vrot.slane %v353_v30, %v855_v47  ;;  %v356_v33 = vmul.f32 %v353_v30, %v337_v21 }
 0x258   :  { %v357_v34 = vsub.f32 %v515_v31, %v356_v33  ;;  %v364_v35 = vmul.f32 %v362_v32, %v326_v6 }
 0x25a   :  { %v369_v36 = vrot.slane %v357_v34, %v855_v47 }
 0x25c   :  { %v371_v37 = vadd.f32 %v369_v36, %v364_v35 }
 0x25e   :  { %v372_v38 = vmax.f32 %v371_v37, 0.0 }
 0x260   :  { %v373_v39 = vpack.c.bf16 %v372_v38, %v372_v38 }
 0x262   :  { %608 = vmatmul.mubr.bf16.vlgmr.msra.gmra.mrb[4].mxu0 %v373_v39 }
 0x335   :  { %v472_v40 = vpop.f32.mrb[4].mxu0 }
 0x336   :  { %478 = vst [vmem:[#allocation8] sm:$0xff] %v472_v40  ;;  %v609_v41 = vpop.f32.mrb[5].mxu0 }
 0x337   :  { %v475_v42 = vpop.f32.mrb[6].mxu0 }
 0x338   :  { %724 = shalt.err (!%p721_p0)
}
 0x339   :  { %s725_s1 = scalar_lea.hbm %s898_s6, 128 }
 0x33a   :  { %p726_p1 = scmp.ne.s32.totalorder %s898_s6, %s725_s1  ;;  %p729_p2 = scmp.lt.u32.totalorder %s725_s1, %s898_s6 }
 0x33c   :  { %p731_p3 = pnand %p729_p2, %p726_p1 }
 0x33e   :  { %734 = shalt.err (!%p731_p3)
}
 0x33f   :  { %488 = dma.vmem_to_hbm [thread:$0]  %s486_s20, 128, %s898_s6, [#allocation4]   ;;  %v610_v43 = vpop.f32.mrb[7].mxu0 }
 0x340   :  { %739 = dma.done.wait [#allocation4], 128  }
 0x341   :  { %740 = vsyncadd [#allocation4], 4294967168 }
 0x342   :  { %492 = vsyncpa [#allocation3], 1 }
 0x343   :  { %493 = vsyncpa [#allocation6], 1 }
 0x344   :  { %494 = vsyncpa [#allocation4], 1 }

</bundles_post_ra>
